<compile_context>
chip_gen: v6e
topology: v6e:2x2x1
jax: 0.10.0
libtpu: 0.0.40
codegen_flags: <defaults>
</compile_context>

<pallas_src>
import functools

import jax
import jax.numpy as jnp
from jax.experimental import pallas as pl
from jax.experimental.pallas import tpu as pltpu

EPS = 1e-6


# --------------------------------------------------------------------------
# Kernel bodies
# --------------------------------------------------------------------------
def _layernorm_f32(x, a2, b2):
    """Pre-norm LayerNorm with torch semantics: unbiased std, /(std+eps)."""
    h = x.shape[-1]
    mean = jnp.mean(x, axis=-1, keepdims=True)
    dev = x - mean
    var_unbiased = jnp.sum(dev * dev, axis=-1, keepdims=True) / (h - 1)
    inv = 1.0 / (jnp.sqrt(var_unbiased) + EPS)   # exact; [bm,1] column is cheap
    return a2 * (dev * inv) + b2


def _sublayer_resident_kernel(x_ref, a2_ref, b2_ref, w_ref, bias_ref, o_ref,
                              *, mxu_dtype):
    """Weight-resident path: whole (H,H) weight lives in VMEM (single buffer)."""
    x = x_ref[...].astype(jnp.float32)                       # [bm, H]
    normed = _layernorm_f32(x, a2_ref[...], b2_ref[...])     # f32 stats
    y = jnp.dot(normed.astype(mxu_dtype), w_ref[...],
                preferred_element_type=jnp.float32)          # MXU, f32 accumulate
    y = y + bias_ref[...]
    # dropout: eval-mode identity
    o_ref[...] = (x + y).astype(o_ref.dtype)


def _sublayer_streamw_kernel(x_ref, a2_ref, b2_ref, w_ref, bias_ref, o_ref,
                             normed_ref, *, mxu_dtype, tn):
    """Streaming-W path for large H: 2-D grid (row tile i, N tile j).

    LayerNorm is computed once per row tile (j == 0) and cached (already cast
    for the MXU) in VMEM scratch; W is streamed as (H, tn) column blocks.
    """
    j = pl.program_id(1)

    @pl.when(j == 0)
    def _():
        x = x_ref[...].astype(jnp.float32)
        normed = _layernorm_f32(x, a2_ref[...], b2_ref[...])
        normed_ref[...] = normed.astype(mxu_dtype)

    y = jnp.dot(normed_ref[...], w_ref[...],
                preferred_element_type=jnp.float32)          # [bm, tn]
    y = y + bias_ref[...]
    col = pl.multiple_of(j * tn, 128)                        # lane-aligned slice
    x_cols = x_ref[:, pl.ds(col, tn)].astype(jnp.float32)
    o_ref[...] = (x_cols + y).astype(o_ref.dtype)


# --------------------------------------------------------------------------
# Wrapper
# --------------------------------------------------------------------------
def sublayer_connection(x, a2, b2, w, bias, *, block_rows=512, block_n=512,
                        matmul_dtype=jnp.bfloat16, force_stream_w=False):
    """x: [B, S, H] -> [B, S, H].  (SublayerConnection forward, eval mode.)"""
    b, s, h = x.shape
    assert h > 1, "LayerNorm with unbiased std needs hidden > 1"
    # TODO(synk): pad+mask path for hidden sizes that are not multiples of 128.
    assert h % 128 == 0, "hidden must be a multiple of 128 (TPU lane width)"
    rows = b * s

    # ---- row tile: large, sublane aligned, and >= 2 grid steps for megacore ----
    bm = min(block_rows, rows)
    if rows >= 16 and 2 * bm > rows:
        # split rows into ~2 balanced tiles so ("parallel",) can use both v7x TCs
        bm = (((rows + 1) // 2) + 7) // 8 * 8
    if bm >= 8:
        bm = max(8, (bm // 8) * 8)
    # else: bm == rows < 8 -> block equals full array dim (allowed)

    itemsize = jnp.dtype(x.dtype).itemsize
    wsize = jnp.dtype(matmul_dtype).itemsize
    headroom = 2 << 20                                       # compiler scratch

    # ---- VMEM budget from the actual part, not a hard 64 MiB clamp ----
    try:
        vmem_cap = pltpu.get_tpu_info().vmem_capacity_bytes
    except Exception:                                        # pragma: no cover
        vmem_cap = 64 << 20                                  # v7x per-TC floor
    vmem_budget = int(vmem_cap * 0.85)

    def resident_bytes(bm_):
        return (2 * bm_ * h * itemsize        # x tile, double-buffered
                + 2 * bm_ * h * itemsize      # out tile, double-buffered
                + h * h * wsize               # W, single-buffered (Buffered(1))
                + 3 * h * 4                   # a_2 / b_2 / bias, single-buffered
                + 5 * bm_ * h * 4             # f32 intermediates in the body
                + headroom)

    use_stream = force_stream_w or resident_bytes(bm) > vmem_budget

    # No host-side pad / slice: Pallas masks the ragged tail row-block.
    x2d = x.reshape(rows, h)
    a2_2d = a2.reshape(1, h).astype(jnp.float32)
    b2_2d = b2.reshape(1, h).astype(jnp.float32)
    bias_2d = bias.reshape(1, h).astype(jnp.float32)
    w_cast = w.astype(matmul_dtype)

    const = dict(pipeline_mode=pl.Buffered(1))               # grid-invariant operands

    if not use_stream:
        # -------- weight-resident path --------
        vmem_limit = int(min(max(resident_bytes(bm), 32 << 20), vmem_budget))
        grid_m = pl.cdiv(rows, bm)
        kernel = functools.partial(_sublayer_resident_kernel, mxu_dtype=matmul_dtype)
        out2d = pl.pallas_call(
            kernel,
            out_shape=jax.ShapeDtypeStruct((rows, h), x.dtype),
            grid_spec=pltpu.PrefetchScalarGridSpec(
                num_scalar_prefetch=0,
                grid=(grid_m,),
                in_specs=[
                    pl.BlockSpec((bm, h), lambda i: (i, 0)),            # x tile
                    pl.BlockSpec((1, h), lambda i: (0, 0), **const),    # a_2
                    pl.BlockSpec((1, h), lambda i: (0, 0), **const),    # b_2
                    pl.BlockSpec((h, h), lambda i: (0, 0), **const),    # W (resident)
                    pl.BlockSpec((1, h), lambda i: (0, 0), **const),    # bias
                ],
                out_specs=pl.BlockSpec((bm, h), lambda i: (i, 0)),
            ),
            compiler_params=pltpu.CompilerParams(
                dimension_semantics=("parallel",),
                vmem_limit_bytes=vmem_limit,
            ),
        )(x2d, a2_2d, b2_2d, w_cast, bias_2d)
    else:
        # -------- streaming-W path (large H / v7x) --------
        tn = max(128, (min(block_n, h) // 128) * 128)
        while h % tn != 0:                                   # tn must divide H
            tn -= 128

        def stream_bytes(bm_, tn_):
            return (2 * bm_ * h * itemsize      # x tile
                    + 2 * bm_ * tn_ * itemsize  # out tile
                    + 2 * h * tn_ * wsize       # streamed W blocks, double-buffered
                    + bm_ * h * wsize           # cached normed tile (scratch)
                    + 2 * h * 4 + 4 * tn_ * 4   # a_2 / b_2 / bias
                    + 5 * bm_ * h * 4           # f32 intermediates
                    + headroom)

        while stream_bytes(bm, tn) > vmem_budget and bm > 8:
            bm = max(8, ((bm // 2) // 8) * 8)
        vmem_limit = int(min(max(stream_bytes(bm, tn), 32 << 20), vmem_budget))
        grid_m = pl.cdiv(rows, bm)
        grid_n = h // tn
        kernel = functools.partial(_sublayer_streamw_kernel,
                                   mxu_dtype=matmul_dtype, tn=tn)
        out2d = pl.pallas_call(
            kernel,
            out_shape=jax.ShapeDtypeStruct((rows, h), x.dtype),
            grid_spec=pltpu.PrefetchScalarGridSpec(
                num_scalar_prefetch=0,
                grid=(grid_m, grid_n),
                in_specs=[
                    pl.BlockSpec((bm, h), lambda i, j: (i, 0)),           # x tile
                    pl.BlockSpec((1, h), lambda i, j: (0, 0), **const),   # a_2
                    pl.BlockSpec((1, h), lambda i, j: (0, 0), **const),   # b_2
                    pl.BlockSpec((h, tn), lambda i, j: (0, j)),           # W streamed
                    pl.BlockSpec((1, tn), lambda i, j: (0, j)),           # bias slice
                ],
                out_specs=pl.BlockSpec((bm, tn), lambda i, j: (i, j)),
                scratch_shapes=[pltpu.VMEM((bm, h), matmul_dtype)],       # normed cache
            ),
            compiler_params=pltpu.CompilerParams(
                dimension_semantics=("parallel", "arbitrary"),
                vmem_limit_bytes=vmem_limit,
            ),
        )(x2d, a2_2d, b2_2d, w_cast, bias_2d)

    return out2d.reshape(b, s, h)


# --------------------------------------------------------------------------
# Pure-JAX reference (mirrors the PyTorch forward, eval mode, f32)
# --------------------------------------------------------------------------
def reference(x, a2, b2, w, bias):
    xf = x.astype(jnp.float32)
    h = xf.shape[-1]
    mean = jnp.mean(xf, axis=-1, keepdims=True)
    dev = xf - mean
    std = jnp.sqrt(jnp.sum(dev * dev, axis=-1, keepdims=True) / (h - 1))
    normed = a2 * dev / (std + EPS) + b2
    y = jnp.matmul(normed, w, precision=jax.lax.Precision.HIGHEST) + bias
    return (xf + y).astype(x.dtype)


if __name__ == "__main__":
    key = jax.random.PRNGKey(0)
    batch, seq, hidden = 2, 8, 128   # hidden kept a multiple of 128 (lane width)

    kx, kw, kb = jax.random.split(key, 3)
    x = jax.random.normal(kx, (batch, seq, hidden), dtype=jnp.float32)

    # LayerNorm params: ones / zeros, as in the module __init__
    a2 = jnp.ones((hidden,), dtype=jnp.float32)
    b2 = jnp.zeros((hidden,), dtype=jnp.float32)

    # Deterministic synthetic sublayer (Linear hidden -> hidden)
    w = jax.random.normal(kw, (hidden, hidden), dtype=jnp.float32) * 0.05
    bias = jax.random.normal(kb, (hidden,), dtype=jnp.float32) * 0.01

    ref = reference(x, a2, b2, w, bias)

    # Default: weight-resident, bf16 MXU inputs / f32 accumulation.
    out = jax.block_until_ready(sublayer_connection(x, a2, b2, w, bias))
    assert out.shape == x.shape
    assert jnp.allclose(out, ref, atol=2e-2, rtol=2e-2), "bf16 path mismatch"

    # f32 MXU path: much tighter parity with the PyTorch forward.
    out_f32 = jax.block_until_ready(
        sublayer_connection(x, a2, b2, w, bias, matmul_dtype=jnp.float32))
    assert jnp.allclose(out_f32, ref, atol=5e-3, rtol=5e-3), "f32 path mismatch"

    # Streaming-W (large-H / v7x) path, forced at small shapes as a sanity check.
    out_stream = jax.block_until_ready(
        sublayer_connection(x, a2, b2, w, bias, force_stream_w=True))
    assert jnp.allclose(out_stream, ref, atol=2e-2, rtol=2e-2), "stream path mismatch"

    print("KERNEL_OK")
</pallas_src>

<mosaic_0001>
module attributes {stable_mosaic.version = 11 : i64} {
  func.func @_sublayer_resident_kernel(%arg0: i32, %arg1: memref<8x128xf32, #tpu.memory_space<vmem>>, %arg2: memref<1x128xf32, #tpu.memory_space<vmem>>, %arg3: memref<1x128xf32, #tpu.memory_space<vmem>>, %arg4: memref<128x128xbf16, #tpu.memory_space<vmem>>, %arg5: memref<1x128xf32, #tpu.memory_space<vmem>>, %arg6: memref<8x128xf32, #tpu.memory_space<vmem>>) attributes {dimension_semantics = [#tpu.dimension_semantics<parallel>], iteration_bounds = array<i64: 2>, scalar_prefetch = 0 : i64, scratch_operands = 0 : i64, tpu.core_type = #tpu.core_type<tc>, window_params = [{transform_indices = @transform_0, window_bounds = array<i64: 8, 128>}, {pipeline_mode = #tpu.pipeline_mode<synchronous>, transform_indices = @transform_1, window_bounds = array<i64: 1, 128>}, {pipeline_mode = #tpu.pipeline_mode<synchronous>, transform_indices = @transform_2, window_bounds = array<i64: 1, 128>}, {pipeline_mode = #tpu.pipeline_mode<synchronous>, transform_indices = @transform_3, window_bounds = array<i64: 128, 128>}, {pipeline_mode = #tpu.pipeline_mode<synchronous>, transform_indices = @transform_4, window_bounds = array<i64: 1, 128>}, {transform_indices = @transform_5, window_bounds = array<i64: 8, 128>}]} {
    %c0 = arith.constant 0 : index
    %c0_0 = arith.constant 0 : index
    %0 = vector.load %arg1[%c0, %c0_0] : memref<8x128xf32, #tpu.memory_space<vmem>>, vector<8x128xf32>
    %c0_1 = arith.constant 0 : index
    %c0_2 = arith.constant 0 : index
    %1 = vector.load %arg2[%c0_1, %c0_2] : memref<1x128xf32, #tpu.memory_space<vmem>>, vector<1x128xf32>
    %c0_3 = arith.constant 0 : index
    %c0_4 = arith.constant 0 : index
    %2 = vector.load %arg3[%c0_3, %c0_4] : memref<1x128xf32, #tpu.memory_space<vmem>>, vector<1x128xf32>
    %cst = arith.constant dense<0.000000e+00> : vector<8xf32>
    %3 = vector.multi_reduction <add>, %0, %cst [1] : vector<8x128xf32> to vector<8xf32>
    %4 = vector.shape_cast %3 : vector<8xf32> to vector<8x1xf32>
    %cst_5 = arith.constant 1.280000e+02 : f32
    %5 = vector.broadcast %cst_5 : f32 to vector<8x1xf32>
    %6 = arith.divf %4, %5 : vector<8x1xf32>
    %7 = vector.broadcast %6 : vector<8x1xf32> to vector<8x128xf32>
    %8 = arith.subf %0, %7 : vector<8x128xf32>
    %9 = arith.mulf %8, %8 : vector<8x128xf32>
    %cst_6 = arith.constant dense<0.000000e+00> : vector<8xf32>
    %10 = vector.multi_reduction <add>, %9, %cst_6 [1] : vector<8x128xf32> to vector<8xf32>
    %11 = vector.shape_cast %10 : vector<8xf32> to vector<8x1xf32>
    %cst_7 = arith.constant 1.270000e+02 : f32
    %12 = vector.broadcast %cst_7 : f32 to vector<8x1xf32>
    %13 = arith.divf %11, %12 : vector<8x1xf32>
    %14 = math.sqrt %13 : vector<8x1xf32>
    %cst_8 = arith.constant 9.99999997E-7 : f32
    %15 = vector.broadcast %cst_8 : f32 to vector<8x1xf32>
    %16 = arith.addf %14, %15 : vector<8x1xf32>
    %cst_9 = arith.constant 1.000000e+00 : f32
    %17 = vector.broadcast %cst_9 : f32 to vector<8x1xf32>
    %18 = arith.divf %17, %16 : vector<8x1xf32>
    %19 = vector.broadcast %18 : vector<8x1xf32> to vector<8x128xf32>
    %20 = arith.mulf %8, %19 : vector<8x128xf32>
    %21 = vector.broadcast %1 : vector<1x128xf32> to vector<8x128xf32>
    %22 = arith.mulf %21, %20 : vector<8x128xf32>
    %23 = vector.broadcast %2 : vector<1x128xf32> to vector<8x128xf32>
    %24 = arith.addf %22, %23 : vector<8x128xf32>
    %25 = arith.truncf %24 : vector<8x128xf32> to vector<8x128xbf16>
    %c0_10 = arith.constant 0 : index
    %c0_11 = arith.constant 0 : index
    %26 = vector.load %arg4[%c0_10, %c0_11] : memref<128x128xbf16, #tpu.memory_space<vmem>>, vector<128x128xbf16>
    %cst_12 = arith.constant dense<0.000000e+00> : vector<8x128xf32>
    %27 = tpu.matmul %25, %26, %cst_12 {dimension_numbers = #tpu.dot_dimension_numbers<[1], [0], [0], [1], [0, 0, 1, 1], [], []>} : vector<8x128xbf16>, vector<128x128xbf16>, vector<8x128xf32> -> vector<8x128xf32>
    %c0_13 = arith.constant 0 : index
    %c0_14 = arith.constant 0 : index
    %28 = vector.load %arg5[%c0_13, %c0_14] : memref<1x128xf32, #tpu.memory_space<vmem>>, vector<1x128xf32>
    %29 = vector.broadcast %28 : vector<1x128xf32> to vector<8x128xf32>
    %30 = arith.addf %27, %29 : vector<8x128xf32>
    %31 = arith.addf %0, %30 : vector<8x128xf32>
    %c0_15 = arith.constant 0 : index
    %c0_16 = arith.constant 0 : index
    %32 = vector.load %arg6[%c0_15, %c0_16] : memref<8x128xf32, #tpu.memory_space<vmem>>, vector<8x128xf32>
    tpu.vector_store %arg6[%c0_15, %c0_16], %31 {strides = array<i32>} : memref<8x128xf32, #tpu.memory_space<vmem>>, vector<8x128xf32>,
    return
  }
  func.func @transform_0(%arg0: i32) -> (i32, i32) {
    %c0_i32 = arith.constant 0 : i32
    %c0_i32_0 = arith.constant 0 : i32
    return %arg0, %c0_i32 : i32, i32
  }
  func.func @transform_1(%arg0: i32) -> (i32, i32) {
    %c0_i32 = arith.constant 0 : i32
    %c0_i32_0 = arith.constant 0 : i32
    %c0_i32_1 = arith.constant 0 : i32
    return %c0_i32, %c0_i32_0 : i32, i32
  }
  func.func @transform_2(%arg0: i32) -> (i32, i32) {
    %c0_i32 = arith.constant 0 : i32
    %c0_i32_0 = arith.constant 0 : i32
    %c0_i32_1 = arith.constant 0 : i32
    return %c0_i32, %c0_i32_0 : i32, i32
  }
  func.func @transform_3(%arg0: i32) -> (i32, i32) {
    %c0_i32 = arith.constant 0 : i32
    %c0_i32_0 = arith.constant 0 : i32
    %c0_i32_1 = arith.constant 0 : i32
    return %c0_i32, %c0_i32_0 : i32, i32
  }
  func.func @transform_4(%arg0: i32) -> (i32, i32) {
    %c0_i32 = arith.constant 0 : i32
    %c0_i32_0 = arith.constant 0 : i32
    %c0_i32_1 = arith.constant 0 : i32
    return %c0_i32, %c0_i32_0 : i32, i32
  }
  func.func @transform_5(%arg0: i32) -> (i32, i32) {
    %c0_i32 = arith.constant 0 : i32
    %c0_i32_0 = arith.constant 0 : i32
    return %arg0, %c0_i32 : i32, i32
  }
}

</mosaic_0001>

<bundles_post_ra>
// kernel: tpu_custom_call.1
= control target key start
LH: loop header
LB: loop body
LE: loop exit
PB: predicated region body
PF: predicated region fallthrough
CT: control target
= control target key end

     0   :  { %10 = vsyncpa [#allocation3], 0  ;;  %s969_s0 = inlined_call_operand.hbm [shape: f32[16,128], index: 0, kind: input, shape index: {}]   ;;  %s970_s1 = inlined_call_operand.vmem [shape: f32[1,128], index: 1, kind: input, shape index: {}]   ;;  %s971_s2 = inlined_call_operand.vmem [shape: f32[1,128], index: 2, kind: input, shape index: {}]   ;;  %s972_s3 = inlined_call_operand.hbm [shape: bf16[128,128], index: 3, kind: input, shape index: {}]   ;;  %s973_s4 = inlined_call_operand.vmem [shape: f32[1,128], index: 4, kind: input, shape index: {}]   ;;  %s974_s5 = inlined_call_operand.hbm [shape: f32[16,128], index: 5, kind: output, shape index: {}]  }
   0x1   :  { %12 = vsyncpa [#allocation3 + $0x1], 0 }
   0x2   :  { %13 = vsyncpa [#allocation6], 0 }
   0x3   :  { %14 = vsyncpa [#allocation4], 0 }
   0x4   :  { %16 = vsyncpa [#allocation4 + $0x1], 0  ;;  %s790_s18 = smov 0   ;;  %s792_s19 = smov 0  }
   0x5   :  { %s794_s20 = smov 0   ;;  %s796_s21 = smov 0  }
   0x6 LB: > { %s811_s22 = sadd.s32 4294967295, %s751_s21   ;;  %s502_s23 = sadd.s32 4294967294, %s751_s21   ;;  %s751_s21 = sphi %s796_s21, %s996_s21   ;;  %s747_s20 = sphi %s794_s20, %s995_s20   ;;  %s743_s19 = sphi %s792_s19, %s994_s19   ;;  %s739_s18 = sphi %s790_s18, %s993_s18  }
   0x7   : > { %p42_p0 = scmp.ne.s32.totalorder %s743_s19, %s739_s18  ;;  %p975_p1 = scmp.eq.s32.totalorder %s811_s22, 0 }
   0x8   : > { %p156_p3 = scmp.eq.s32.totalorder %s502_s23, 1  ;;  %p503_p5 = scmp.ge.s32.totalorder %s751_s21, 1 }
   0x9   : > { %p820_p4 = por %p975_p1, %p42_p0  ;;  %p163_p7 = scmp.lt.s32.totalorder %s751_s21, 3 }
   0xa   : > { %p825_p6 = por %p156_p3, %p42_p0  ;;  %s753_s27 = smov [#allocation5]  }
   0xb   : > { %s979_s24 = scalar_select %p820_p4, 1, 0 }
   0xc   : > { %s980_s25 = scalar_select %p825_p6, 1, 0 }
   0xd   : > { %p830_p8 = pnand %p503_p5, %p163_p7  ;;  %s181_s28 = sshll.u32 %s753_s27, 4  ;;  %s182_s28 = int_to_ptr.vmem [resolvable:$true] %s181_s28 }
   0xe   : > { %s844_s30 = sadd.s32 1, %s751_s21   ;;  %s29_s6 = sadd.s32 1, %s747_s20 }
   0xf   : > { %s981_s26 = scalar_select %p830_p8, 1, 0 }
  0x10   : > { %p564_p9 = pneg %p830_p8  ;;  %s26_s7 = ssub.s32 %s751_s21, %s844_s30 }
  0x11   : > { %s640_s8 = scalar_lea.vmem %s182_s28, 1024  ;;  %p648_p5 = scmp.lt.s32.totalorder %s182_s28, %s182_s28 }
  0x12   : > { %p839_p11 = pnand %p564_p9, %p975_p1  ;;  %p641_p13 = scmp.ne.s32.totalorder %s182_s28, %s640_s8 }
  0x13   : > { %p649_p7 = scmp.lt.s32.totalorder %s640_s8, %s640_s8 }
  0x14   : > { %p631_p12 = pneg %p839_p11 }
  0x15   : > { %p650_p10 = por %p649_p7, %p648_p5 }
  0x16   : > { %p643_p0 = pnand %p641_p13, %p631_p12 }
  0x18   : > { %p644_p3 = pneg %p643_p0 }
  0x1a   : > { %p651_p2 = pnand %p650_p10, %p644_p3 }
  0x1c   : > { %654 = shalt.err (!%p651_p2)
}
  0x1d   : > { %s754_s9 = smov 64   ;;  %s755_s10 = smov 4  }
  0x1e   : > { %567 = dma.hbm_to_vmem [thread:$0]  (!%p839_p11), %s972_s3, 1024, %s182_s28, [#allocation6], %s754_s9, %s754_s9, %s755_s10  }
  0x1f   : > { %p27_p9 = scmp.eq.s32.totalorder %s26_s7, 0  ;;  %p36_p12 = scmp.ne.s32.totalorder %s747_s20, %s743_s19 }
  0x20   : > { %p37_p10 = scmp.eq.s32.totalorder %s751_s21, 0  ;;  %p577_p2 = scmp.lt.s32.totalorder %s751_s21, 2 }
  0x21   : > { %s861_s13 = scalar_select %p27_p9, %s747_s20, %s29_s6  }
  0x22   : > { %p38_p13 = por %p37_p10, %p36_p12  ;;  %p983_p0 = scmp.eq.s32.totalorder %s811_s22, 1 }
  0x23   : > { %s198_s15 = sand.u32 1, %s747_s20   ;;  %s507_s16 = sshll.u32 %s751_s21, 7 }
  0x24   : > { %p865_p3 = por %p983_p0, %p36_p12  ;;  %s506_s17 = sshll.u32 %s198_s15, 3 }
  0x25   : > { %s874_s29 = scalar_lea.hbm %s969_s0, %s507_s16  ;;  %s202_s28 = scalar_lea.vmem [#allocation2], %s506_s17 }
  0x26   : > { %s984_s14 = scalar_select %p865_p3, 1, 0 }
  0x27   : > { %s209_s6 = sshll.u32 %s202_s28, 4  ;;  %p876_p11 = pnand %p577_p2, %p38_p13  ;;  %s210_s6 = int_to_ptr.vmem [resolvable:$true] %s209_s6 }
  0x28   : > { %s199_s8 = scalar_lea.sflag [#allocation3], %s198_s15  ;;  %s655_s9 = scalar_lea.hbm %s874_s29, 128 }
  0x29   : > { %p656_p5 = scmp.ne.s32.totalorder %s874_s29, %s655_s9  ;;  %p657_p7 = pneg %p876_p11 }
  0x2a   : > { %s660_s12 = scalar_lea.hbm %s969_s0, 256  ;;  %p661_p10 = scmp.lt.s32.totalorder %s874_s29, %s969_s0 }
  0x2b   : > { %p658_p9 = pnand %p657_p7, %p656_p5  ;;  %p662_p2 = scmp.lt.s32.totalorder %s660_s12, %s655_s9 }
  0x2d   : > { %p659_p12 = pneg %p658_p9  ;;  %p663_p13 = por %p662_p2, %p661_p10 }
  0x2f   : > { %p664_p0 = pnand %p663_p13, %p659_p12 }
  0x31   : > { %667 = shalt.err (!%p664_p0)
}
  0x32   : > { %s668_s23 = scalar_lea.vmem %s210_s6, 128  ;;  %s756_s15 = smov [#allocation2]  }
  0x33   : > { %p669_p1 = scmp.ne.s32.totalorder %s210_s6, %s668_s23  ;;  %s673_s27 = sshll.u32 %s756_s15, 4  ;;  %s674_s27 = int_to_ptr.vmem [resolvable:$false] %s673_s27 }
  0x34   : > { %s675_s28 = scalar_lea.vmem %s674_s27, 256  ;;  %p676_p5 = scmp.lt.s32.totalorder %s210_s6, %s674_s27 }
  0x35   : > { %p671_p6 = pnand %p669_p1, %p657_p7  ;;  %p677_p9 = scmp.lt.s32.totalorder %s675_s28, %s668_s23 }
  0x37   : > { %p672_p3 = pneg %p671_p6  ;;  %p678_p4 = por %p677_p9, %p676_p5 }
  0x39   : > { %p679_p8 = pnand %p678_p4, %p672_p3 }
  0x3b   : > { %682 = shalt.err (!%p679_p8)
}
  0x3c   : > { %571 = dma.hbm_to_vmem [thread:$0]  (!%p876_p11), %s874_s29, 128, %s210_s6, %s199_s8  }
  0x3d   : > { %p986_p12 = scmp.ne.s32.totalorder %s981_s26, 0 }
  0x3e   : > { %s897_s9 = sand.u32 (!%p986_p12), 1, %s743_s19   ;;  %p987_p1 = scmp.ne.s32.totalorder (!%p986_p12), %s979_s24, 0 }
  0x3f   : > { %218 = sbr.rel (%p986_p12) target bundleno = 610 (0x262), region = 40  ;;  %s509_s10 = sshll.u32 (!%p986_p12), %s897_s9, 3 }
  0x40   : > { %s221_s11 = scalar_lea.sflag (!%p986_p12), [#allocation3], %s897_s9  ;;  %s224_s12 = scalar_lea.vmem (!%p986_p12), [#allocation2], %s509_s10 }
  0x44   : > { %726 = dma.done.wait (%p987_p1), %s221_s11, 128  }
  0x45   : > { %728 = vsyncadd (%p987_p1), %s221_s11, 4294967168  ;;  %p988_p4 = scmp.eq.s32.totalorder %s811_s22, 0 }
  0x47   : > { %730 = dma.done.wait (%p988_p4), [#allocation6], 1024   ;;  %p989_p6 = pmov %p988_p4 }
  0x48   : > { %v256_v0 = vld [vmem:[%s224_s12] sm:$0xff]  ;;  %v757_v6 = vmov 0.0   ;;  %v619_v8 = vld [vmem:[#allocation5 + $0x28] sm:$0xff]   ;;  %v620_v9 = vld [vmem:[#allocation5 + $0x20] sm:$0xff]   ;;  %vm758_vm0 = vmmov 0   ;;  %s524_s16 = sshll.u32 %s811_s22, 7 }
  0x49   : > { %732 = vsyncadd (%p989_p6), [#allocation6], 4294966272  ;;  %259 = vadd.xlane.f32.xlu0 %v256_v0  ;;  %v617_v5 = vld [vmem:[#allocation5 + $0x38] sm:$0xff]   ;;  %536 = vmatprep.subr.bf16.mxu0 %v757_v6  ;;  %v618_v7 = vld [vmem:[#allocation5 + $0x30] sm:$0xff]   ;;  %s254_s17 = scalar_lea.vmem [#allocation7], %s509_s10  ;;  %s926_s28 = scalar_lea.hbm %s974_s5, %s524_s16 }
  0x4a   : > { %537 = vmatpush3.bf16.msra.mxu0 %v617_v5  ;;  %552 = vmatprep.mubr.msk.bf16.mxu0 %vm758_vm0, %v757_v6  ;;  %v621_v10 = vld [vmem:[#allocation5 + $0x18] sm:$0xff]   ;;  %v622_v11 = vld [vmem:[#allocation5 + $0x10] sm:$0xff]   ;;  %v623_v12 = vld [vmem:[#allocation5 + $0x8] sm:$0xff]   ;;  %s422_s23 = sshll.u32 %s254_s17, 4  ;;  %s409_s22 = scalar_lea.sflag [#allocation4], %s897_s9  ;;  %s928_s23 = int_to_ptr.vmem [resolvable:$true] %s422_s23 }
  0x4b   : > { %538 = vmatprep.subr.bf16.mxu0 %v757_v6  ;;  %v624_v13 = vld [vmem:[#allocation5] sm:$0xff]   ;;  %v512_v23 = vld [vmem:[%s970_s1] ss:$0 sm:$0xff]  ;;  %s683_s11 = scalar_lea.vmem %s928_s23, 128  ;;  %p990_p3 = scmp.ne.s32.totalorder %s984_s14, 0 }
  0x4c   : > { %v513_v25 = vld [vmem:[%s971_s2] ss:$0 sm:$0xff]  ;;  %p684_p8 = scmp.ne.s32.totalorder %s928_s23, %s683_s11  ;;  %s759_s10 = smov [#allocation7]  }
  0x4d   : > { %v514_v29 = vld [vmem:[%s973_s4] ss:$0 sm:$0xff]  ;;  %s687_s12 = sshll.u32 %s759_s10, 4  ;;  %s688_s12 = int_to_ptr.vmem [resolvable:$false] %s687_s12 }
  0x4e   : > { %539 = vmatpush3.bf16.msra.mxu0 %v618_v7  ;;  %p685_p11 = pnand %p684_p8, %p990_p3  ;;  %s689_s24 = scalar_lea.vmem %s688_s12, 256 }
  0x4f   : > { %540 = vmatprep.subr.bf16.mxu0 %v757_v6  ;;  %p690_p10 = scmp.lt.s32.totalorder %s928_s23, %s688_s12  ;;  %p691_p2 = scmp.lt.s32.totalorder %s689_s24, %s683_s11 }
  0x50   : > { %p686_p7 = pneg %p685_p11 }
  0x51   : > { %p692_p13 = por %p691_p2, %p690_p10 }
  0x52   : > { %541 = vmatpush3.bf16.msra.mxu0 %v619_v8 }
  0x53   : > { %542 = vmatprep.subr.bf16.mxu0 %v757_v6  ;;  %p693_p0 = pnand %p692_p13, %p686_p7 }
  0x56   : > { %543 = vmatpush3.bf16.msra.mxu0 %v620_v9 }
  0x57   : > { %544 = vmatprep.subr.bf16.mxu0 %v757_v6 }
  0x5a   : > { %545 = vmatpush3.bf16.msra.mxu0 %v621_v10 }
  0x5b   : > { %546 = vmatprep.subr.bf16.mxu0 %v757_v6 }
  0x5e   : > { %547 = vmatpush3.bf16.msra.mxu0 %v622_v11 }
  0x5f   : > { %548 = vmatprep.subr.bf16.mxu0 %v757_v6 }
  0x62   : > { %549 = vmatpush3.bf16.msra.mxu0 %v623_v12 }
  0x63   : > { %550 = vmatprep.subr.bf16.mxu0 %v757_v6 }
  0x66   : > { %551 = vmatpush3.bf16.msra.mxu0 %v624_v13 }
  0xd2   : > { %v260_v1 = vpop.xlane.xlu0 %259 }
  0xd3   : > { %v262_v2 = vmul.f32 0.0078125, %v260_v1 }
  0xd5   : > { %v263_v3 = vsub.f32 %v256_v0, %v262_v2 }
  0xd7   : > { %v264_v4 = vmul.f32 %v263_v3, %v263_v3 }
  0xd9   : > { %265 = vadd.xlane.f32.xlu0 %v264_v4 }
 0x162   : > { %v266_v14 = vpop.xlane.xlu0 %265 }
 0x163   : > { %v268_v15 = vmul.f32 0.007874016, %v266_v14 }
 0x165   : > { %625 = vrsqrt.f32 %v268_v15  ;;  %vm271_vm1 = vcmp.eq.f32.partialorder %v268_v15, inf  ;;  %v274_v18 = vand.u32 2147483648, %v268_v15  ;;  %vm273_vm2 = vcmp.eq.f32.partialorder %v268_v15, 0.0 }
 0x172   : > { %v626_v16 = vpop.eup %625 }
 0x173   : > { %v270_v17 = vmul.f32 %v626_v16, %v268_v15 }
 0x175   : > { %v272_v19 = vsel %vm271_vm1, %v268_v15, %v270_v17 }
 0x176   : > { %v275_v20 = vsel %vm273_vm2, %v274_v18, %v272_v19 }
 0x177   : > { %v276_v21 = vadd.f32 1e-06, %v275_v20 }
 0x179   : > { %627 = vrcp.f32 %v276_v21 }
 0x186   : > { %v628_v22 = vpop.eup %627 }
 0x187   : > { %v279_v24 = vmul.f32 %v628_v22, %v263_v3 }
 0x189   : > { %v286_v26 = vmul.f32 %v512_v23, %v279_v24 }
 0x18b   : > { %v293_v27 = vadd.f32 %v513_v25, %v286_v26 }
 0x18d   : > { %v294_v28 = vpack.c.bf16 %v293_v27, %v293_v27 }
 0x18f   : > { %553 = vmatmul.mubr.bf16.vlgmr.msra.gmra.mxu0 %v294_v28 }
 0x24f   : > { %v400_v30 = vpop.f32.mrf.mxu0 }
 0x250   : > { %v401_v31 = vadd.f32 %v514_v29, %v400_v30 }
 0x251   : > { %v554_v32 = vpop.f32.mrf.mxu0 }
 0x252   : > { %v406_v33 = vadd.f32 %v401_v31, %v256_v0 }
 0x253   : > { %v403_v34 = vpop.f32.mrf.mxu0 }
 0x254   : > { %407 = vst [vmem:[%s254_s17] sm:$0xff] %v406_v33 }
 0x255   : > { %v555_v35 = vpop.f32.mrf.mxu0 }
 0x256   : > { %696 = shalt.err (!%p693_p0)
}
 0x257   : > { %s697_s26 = scalar_lea.hbm %s926_s28, 128  ;;  %s701_s6 = scalar_lea.hbm %s974_s5, 256 }
 0x258   : > { %p698_p5 = scmp.ne.s32.totalorder %s926_s28, %s697_s26  ;;  %p702_p1 = scmp.lt.s32.totalorder %s926_s28, %s974_s5 }
 0x259   : > { %p703_p4 = scmp.lt.s32.totalorder %s701_s6, %s697_s26 }
 0x25a   : > { %p699_p9 = pnand %p698_p5, %p990_p3 }
 0x25b   : > { %p704_p6 = por %p703_p4, %p702_p1 }
 0x25c   : > { %p700_p12 = pneg %p699_p9 }
 0x25e   : > { %p705_p8 = pnand %p704_p6, %p700_p12 }
 0x260   : > { %708 = shalt.err (!%p705_p8)
}
 0x261   : > { %562 = dma.vmem_to_hbm [thread:$0]  (%p990_p3), %s928_s23, 128, %s926_s28, %s409_s22  }
 0x262 PF: > { %s434_s16 = sand.u32 1, %s739_s18   ;;  %p991_p11 = scmp.ne.s32.totalorder %s980_s25, 0 }
 0x263   : > { %p992_p7 = scmp.ge.s32.totalorder %s751_s21, 2  ;;  %s435_s17 = scalar_lea.sflag [#allocation4], %s434_s16 }
 0x265   : > { %p573_p10 = pnand %p992_p7, %p991_p11 }
 0x267   : > { %p574_p2 = pneg %p573_p10 }
 0x269   : > { %734 = dma.done.wait (%p574_p2), %s435_s17, 128  }
 0x26a   : > { %736 = vsyncadd (%p574_p2), %s435_s17, 4294967168  ;;  %p19_p13 = scmp.ge.s32.totalorder %s844_s30, 4   ;;  %s993_s18 = smov %s743_s19 }
 0x26b   : > { %s994_s19 = smov %s747_s20  ;;  %s995_s20 = smov %s861_s13 }
 0x26c   : > { %s996_s21 = smov %s844_s30  ;;  %21 = sbr.rel (!%p19_p13) target bundleno = 6 (0x6), region = 89 }
 0x271   :  { %440 = vsyncpa [#allocation3], 1 }
 0x272   :  { %442 = vsyncpa [#allocation3 + $0x1], 1 }
 0x273   :  { %443 = vsyncpa [#allocation6], 1 }
 0x274   :  { %444 = vsyncpa [#allocation4], 1 }
 0x275   :  { %446 = vsyncpa [#allocation4 + $0x1], 1 }

</bundles_post_ra>
